<compile_context>
chip_gen: v5e
topology: v5e:2x2
jax: 0.10.0
libtpu: 0.0.40
codegen_flags: <defaults>
</compile_context>

<pallas_src>
import math
from functools import partial

import jax
import jax.numpy as jnp
from jax import lax
from jax.experimental import pallas as pl
from jax.experimental.pallas import tpu as pltpu


_VMEM_LIMIT_BYTES = 48 * 1024 * 1024   # safe on v5e/v6e (128 MiB) and v7x (64 MiB)


# ------------------------------- helpers -------------------------------------

def _round_up(x, m):
    return ((x + m - 1) // m) * m


def _tile(dim, target, aligns=(256, 128)):
    """Largest tile <= target that divides `dim`, preferring the first alignment in `aligns`."""
    if dim <= target:
        return dim
    for align in aligns:
        t = (target // align) * align
        while t >= align:
            if dim % t == 0:
                return t
            t -= align
    return dim


def _pick_head_block(n_head, dh):
    """Largest head block with lane-dense width C = hb*dh (multiple of 128), capped at C<=256."""
    best = None
    for cand in range(1, n_head + 1):
        if n_head % cand:
            continue
        c = cand * dh
        if c % 128 == 0 and c <= 256:
            best = cand                      # keep the largest qualifying candidate
    if best is None:
        for cand in range(1, n_head + 1):
            if n_head % cand == 0 and (cand * dh) % 128 == 0:
                best = cand
                break
    return best if best is not None else n_head


# --------------------------- tiled linear kernel ------------------------------

def _linear_kernel(*refs, activation, has_residual, has_pre_ln, has_res_ln, has_ln, ln_eps):
    it = iter(refs)
    x_ref = next(it)
    w_ref = next(it)
    b_ref = next(it)
    res_ref = next(it) if has_residual else None
    if has_pre_ln:
        pg_ref = next(it)
        pb_ref = next(it)
    if has_res_ln:
        rg_ref = next(it)
        rb_ref = next(it)
    if has_ln:
        g_ref = next(it)
        beta_ref = next(it)
    o_ref = next(it)
    acc_ref = next(it)

    k = pl.program_id(2)

    @pl.when(k == 0)
    def _init():
        acc_ref[...] = jnp.zeros_like(acc_ref)

    x = x_ref[...]
    if has_pre_ln:                           # fused input-side LayerNorm (requires tk == K)
        xf = x.astype(jnp.float32)
        mu = jnp.mean(xf, axis=-1, keepdims=True)
        xc = xf - mu
        var = jnp.mean(xc * xc, axis=-1, keepdims=True)
        x = xc * lax.rsqrt(var + ln_eps)
        x = x * pg_ref[...].astype(jnp.float32) + pb_ref[...].astype(jnp.float32)
    # bf16 operands into the MXU; fp32 accumulation.
    acc_ref[...] += jnp.dot(x.astype(jnp.bfloat16), w_ref[...].astype(jnp.bfloat16),
                            preferred_element_type=jnp.float32)

    @pl.when(k == pl.num_programs(2) - 1)
    def _finalize():
        y = acc_ref[...] + b_ref[...].astype(jnp.float32)
        if activation == "relu":
            y = jnp.maximum(y, 0.0)
        if has_residual:
            r = res_ref[...].astype(jnp.float32)
            if has_res_ln:                   # normalize residual before adding (pre-norm path)
                mu = jnp.mean(r, axis=-1, keepdims=True)
                rc = r - mu
                var = jnp.mean(rc * rc, axis=-1, keepdims=True)
                r = rc * lax.rsqrt(var + ln_eps)
                r = r * rg_ref[...].astype(jnp.float32) + rb_ref[...].astype(jnp.float32)
            y = y + r
        if has_ln:
            mu = jnp.mean(y, axis=-1, keepdims=True)
            yc = y - mu
            var = jnp.mean(yc * yc, axis=-1, keepdims=True)
            y = yc * lax.rsqrt(var + ln_eps)
            y = y * g_ref[...].astype(jnp.float32) + beta_ref[...].astype(jnp.float32)
        o_ref[...] = y.astype(o_ref.dtype)


def linear(x, w, b, *, residual=None, residual_ln=None, pre_ln=None, ln=None,
           activation=None, out_dtype=None, tm=256, tn=512, tk=512, ln_eps=1e-12):
    """Tiled y = act(LN?(x) @ w + b) [+ LN?(residual)] [-> LayerNorm].

    pre_ln requires tk == K (full feature dim in one tile); ln / residual_ln require tn == N.
    """
    M, K = x.shape
    N = w.shape[1]
    tm = _tile(M, tm, (16, 8))
    tk = K if pre_ln is not None else _tile(K, tk, (256, 128))
    tn = N if (ln is not None or residual_ln is not None) else _tile(N, tn, (256, 128))

    grid = (M // tm, N // tn, K // tk)
    in_specs = [
        pl.BlockSpec((tm, tk), lambda i, j, k: (i, k)),
        pl.BlockSpec((tk, tn), lambda i, j, k: (k, j)),
        pl.BlockSpec((1, tn), lambda i, j, k: (0, j)),
    ]
    args = [x, w, b.reshape(1, N)]
    if residual is not None:
        in_specs.append(pl.BlockSpec((tm, tn), lambda i, j, k: (i, j)))
        args.append(residual)
    if pre_ln is not None:
        pg, pb = pre_ln
        in_specs += [pl.BlockSpec((1, tk), lambda i, j, k: (0, k)),
                     pl.BlockSpec((1, tk), lambda i, j, k: (0, k))]
        args += [pg.reshape(1, K), pb.reshape(1, K)]
    if residual_ln is not None:
        rg, rb = residual_ln
        in_specs += [pl.BlockSpec((1, tn), lambda i, j, k: (0, j)),
                     pl.BlockSpec((1, tn), lambda i, j, k: (0, j))]
        args += [rg.reshape(1, N), rb.reshape(1, N)]
    if ln is not None:
        g, beta = ln
        in_specs += [pl.BlockSpec((1, tn), lambda i, j, k: (0, j)),
                     pl.BlockSpec((1, tn), lambda i, j, k: (0, j))]
        args += [g.reshape(1, N), beta.reshape(1, N)]

    kernel = partial(_linear_kernel, activation=activation,
                     has_residual=residual is not None,
                     has_pre_ln=pre_ln is not None,
                     has_res_ln=residual_ln is not None,
                     has_ln=ln is not None, ln_eps=ln_eps)
    return pl.pallas_call(
        kernel,
        out_shape=jax.ShapeDtypeStruct((M, N), out_dtype or x.dtype),
        grid=grid,
        in_specs=in_specs,
        out_specs=pl.BlockSpec((tm, tn), lambda i, j, k: (i, j)),
        scratch_shapes=[pltpu.VMEM((tm, tn), jnp.float32)],
        compiler_params=pltpu.CompilerParams(
            dimension_semantics=("parallel", "parallel", "arbitrary"),
            vmem_limit_bytes=_VMEM_LIMIT_BYTES),
    )(*args)


# ----------------------------- fused FFN kernel --------------------------------

def _ffn_kernel(*refs, has_ln, ln_eps):
    it = iter(refs)
    x_ref = next(it)
    w1_ref = next(it)
    b1_ref = next(it)
    w2_ref = next(it)
    b2_ref = next(it)
    res_ref = next(it)
    if has_ln:
        g_ref = next(it)
        beta_ref = next(it)
    o_ref = next(it)
    acc_ref = next(it)

    f = pl.program_id(1)

    @pl.when(f == 0)
    def _init():
        acc_ref[...] = jnp.zeros_like(acc_ref)

    h = jnp.dot(x_ref[...].astype(jnp.bfloat16), w1_ref[...].astype(jnp.bfloat16),
                preferred_element_type=jnp.float32)
    h = jnp.maximum(h + b1_ref[...].astype(jnp.float32), 0.0)
    acc_ref[...] += jnp.dot(h.astype(jnp.bfloat16), w2_ref[...].astype(jnp.bfloat16),
                            preferred_element_type=jnp.float32)

    @pl.when(f == pl.num_programs(1) - 1)
    def _finalize():
        y = (acc_ref[...] + b2_ref[...].astype(jnp.float32)
             + res_ref[...].astype(jnp.float32))
        if has_ln:
            mu = jnp.mean(y, axis=-1, keepdims=True)
            yc = y - mu
            var = jnp.mean(yc * yc, axis=-1, keepdims=True)
            y = yc * lax.rsqrt(var + ln_eps)
            y = y * g_ref[...].astype(jnp.float32) + beta_ref[...].astype(jnp.float32)
        o_ref[...] = y.astype(o_ref.dtype)


def ffn(x, w1, b1, w2, b2, residual, *, ln=None, tm=256, tf=512, ln_eps=1e-12):
    """Fused FFN: LN?(relu(x @ w1 + b1) @ w2 + b2 + residual).  FF intermediate stays in VMEM."""
    M, D = x.shape
    F = w1.shape[1]
    tm = _tile(M, tm, (16, 8))
    tf = _tile(F, tf, (256, 128))

    grid = (M // tm, F // tf)
    in_specs = [
        pl.BlockSpec((tm, D), lambda i, f: (i, 0)),
        pl.BlockSpec((D, tf), lambda i, f: (0, f)),
        pl.BlockSpec((1, tf), lambda i, f: (0, f)),
        pl.BlockSpec((tf, D), lambda i, f: (f, 0)),
        pl.BlockSpec((1, D), lambda i, f: (0, 0)),
        pl.BlockSpec((tm, D), lambda i, f: (i, 0)),
    ]
    args = [x, w1, b1.reshape(1, F), w2, b2.reshape(1, D), residual]
    if ln is not None:
        g, beta = ln
        in_specs += [pl.BlockSpec((1, D), lambda i, f: (0, 0)),
                     pl.BlockSpec((1, D), lambda i, f: (0, 0))]
        args += [g.reshape(1, D), beta.reshape(1, D)]

    return pl.pallas_call(
        partial(_ffn_kernel, has_ln=ln is not None, ln_eps=ln_eps),
        out_shape=jax.ShapeDtypeStruct((M, D), x.dtype),
        grid=grid,
        in_specs=in_specs,
        out_specs=pl.BlockSpec((tm, D), lambda i, f: (i, 0)),
        scratch_shapes=[pltpu.VMEM((tm, D), jnp.float32)],
        compiler_params=pltpu.CompilerParams(
            dimension_semantics=("parallel", "arbitrary"),
            vmem_limit_bytes=_VMEM_LIMIT_BYTES),
    )(*args)


# ------------------- relative multi-head attention kernel ----------------------

def _rel_attn_kernel(q_ref, k_ref, v_ref, r_ref, u_ref, vb_ref, kb_ref, o_ref, o_acc,
                     *, hb, dh, tq, scale):
    L = q_ref.shape[0]
    P_pad = r_ref.shape[0]
    nq = L // tq

    q = q_ref[...].astype(jnp.float32)                 # (L, C)
    u = u_ref[...].astype(jnp.float32)                 # (1, C)
    vb = vb_ref[...].astype(jnp.float32)               # (1, C)
    qu = (q + u).astype(jnp.bfloat16)                  # bf16 MXU operands
    qv = (q + vb).astype(jnp.bfloat16)
    k = k_ref[...].astype(jnp.bfloat16)                # (L, C)
    vv = v_ref[...].astype(jnp.bfloat16)               # (L, C)
    r = r_ref[...].astype(jnp.bfloat16)                # (P_pad, C)
    kb = kb_ref[...].astype(jnp.float32)               # (1, L) additive key-padding mask (fp32)

    dims = (((1,), (1,)), ((), ()))                    # contract last dims, no relayout of k/r
    for hd in range(hb):                               # static unroll over heads in this block
        lo, hi = hd * dh, (hd + 1) * dh
        k_h, v_h, r_h = k[:, lo:hi], vv[:, lo:hi], r[:, lo:hi]
        for qi in range(nq):                           # static query chunks: bounds VMEM to O(tq*L)
            q0 = qi * tq
            qu_h = qu[q0:q0 + tq, lo:hi]
            qv_h = qv[q0:q0 + tq, lo:hi]

            ac = lax.dot_general(qu_h, k_h, dims,
                                 preferred_element_type=jnp.float32)       # (tq, L)
            bdf = lax.dot_general(qv_h, r_h, dims,
                                  preferred_element_type=jnp.float32)      # (tq, P_pad)

            # Transformer-XL relative shift on the XLU with the (L-1) offset folded into the
            # roll shift so the result slice starts at lane 0 (lane-aligned):
            #   rolled[ii, c] = bdf[ii, (c + L-1 - q0 - ii) mod P_pad]
            #   bd[ii, j]     = bdf[ii, j - (q0+ii) + L - 1]
            rolled = pltpu.roll(bdf, P_pad - (L - 1) + q0, 1, stride=1, stride_axis=0)
            bd = rolled[:, :L]                                              # (tq, L)

            s = (ac + bd) * scale + kb                                      # fp32 scores + mask
            m = jnp.max(s, axis=-1, keepdims=True)
            e = jnp.exp(s - m)
            p = e * pl.reciprocal(jnp.sum(e, axis=-1, keepdims=True), approx=True)

            # stream this (head, q-chunk) result straight into the fp32 output scratch
            o_acc[q0:q0 + tq, lo:hi] = jnp.dot(p.astype(jnp.bfloat16), v_h,
                                               preferred_element_type=jnp.float32)

    o_ref[...] = o_acc[...].astype(o_ref.dtype)        # single lane-dense store


def rel_attention(qkv, r_pad, u_row, v_row, key_bias, *, n_head, dh, scale):
    """qkv: (B, L, 3D) packed q|k|v (bf16), r_pad: (P_pad, D), u/v_row: (1, D), key_bias: (B,1,L)."""
    B, L, _ = qkv.shape
    D = n_head * dh
    P_pad = r_pad.shape[0]

    hb = _pick_head_block(n_head, dh)       # lane-dense head block, C in [128, 256] when possible
    C = hb * dh
    nhb = n_head // hb
    qb = D // C                             # k starts at column block qb, v at 2*qb
    tq = _tile(L, 256, (16, 8))             # in-kernel query chunk

    kernel = partial(_rel_attn_kernel, hb=hb, dh=dh, tq=tq, scale=scale)
    return pl.pallas_call(
        kernel,
        out_shape=jax.ShapeDtypeStruct((B, L, D), jnp.bfloat16),
        grid=(nhb, B),                      # head block outermost: r/u/v DMAs reused across batch
        in_specs=[
            pl.BlockSpec((None, L, C), lambda h, b: (b, 0, h)),           # q slice of qkv
            pl.BlockSpec((None, L, C), lambda h, b: (b, 0, h + qb)),      # k slice of qkv
            pl.BlockSpec((None, L, C), lambda h, b: (b, 0, h + 2 * qb)),  # v slice of qkv
            pl.BlockSpec((P_pad, C), lambda h, b: (0, h)),                # rel pos projection
            pl.BlockSpec((1, C), lambda h, b: (0, h)),                    # u bias row
            pl.BlockSpec((1, C), lambda h, b: (0, h)),                    # v bias row
            pl.BlockSpec((None, 1, L), lambda h, b: (b, 0, 0)),           # key mask bias
        ],
        out_specs=pl.BlockSpec((None, L, C), lambda h, b: (b, 0, h)),
        scratch_shapes=[pltpu.VMEM((L, C), jnp.float32)],
        compiler_params=pltpu.CompilerParams(
            dimension_semantics=("parallel", "parallel"),
            vmem_limit_bytes=_VMEM_LIMIT_BYTES),
    )(qkv, qkv, qkv, r_pad, u_row, v_row, key_bias)


# ------------------------- RelTransformerLayer forward -------------------------

def rel_transformer_layer(h, mask, pos_embed, params, after_norm=True):
    B, L, D = h.shape
    H = params["n_head"]
    dh = D // H
    P = pos_embed.shape[0]
    assert P == 2 * L - 1, "pos_embed must have 2L-1 rows (offset j-i+L-1)"

    x = h.reshape(B * L, D)

    # ---- fused Q|K|V projection (pre-norm: LayerNorm fused as input prologue) ----
    pre_ln = None if after_norm else (params["ln1_g"], params["ln1_b"])
    qkv = linear(x, params["wqkv"], params["bqkv"], pre_ln=pre_ln,
                 out_dtype=jnp.bfloat16).reshape(B, L, 3 * D)

    # relative position projection; rows padded to a 128 multiple (padded rows are never read
    # after the relative shift, so their content is irrelevant).
    P_pad = _round_up(P, 128)
    pos_pad = jnp.zeros((P_pad, D), pos_embed.dtype).at[:P, :].set(pos_embed)
    r_pad = linear(pos_pad, params["wr"], params["br"], out_dtype=jnp.bfloat16)   # (P_pad, D)

    # key padding mask -> additive bias (0 valid, -1e30 padded; scores stay fp32)
    key_bias = jnp.where(mask, 0.0, -1e30).astype(jnp.float32).reshape(B, 1, L)

    attn = rel_attention(
        qkv, r_pad,
        params["u"].reshape(1, D), params["v"].reshape(1, D),
        key_bias, n_head=H, dh=dh, scale=1.0 / math.sqrt(dh))                     # (B, L, D) bf16

    # ---- out-projection + residual + LayerNorm epilogue(s); dropout = identity (eval) ----
    if after_norm:
        # post-norm: hh = LN1(attn_proj + x)
        hh = linear(attn.reshape(B * L, D), params["wo"], params["bo"],
                    residual=x, ln=(params["ln1_g"], params["ln1_b"]),
                    out_dtype=jnp.float32)
        out = ffn(hh, params["w1"], params["b1"], params["w2"], params["b2"],
                  residual=hh, ln=(params["ln2_g"], params["ln2_b"]))
    else:
        # pre-norm: hh = LN2(attn_proj + LN1(x))   (LN1 applied to residual in epilogue)
        hh = linear(attn.reshape(B * L, D), params["wo"], params["bo"],
                    residual=x, residual_ln=(params["ln1_g"], params["ln1_b"]),
                    ln=(params["ln2_g"], params["ln2_b"]),
                    out_dtype=jnp.float32)
        out = ffn(hh, params["w1"], params["b1"], params["w2"], params["b2"],
                  residual=hh, ln=None)
    return out.reshape(B, L, D)


# ------------------------------ param init ------------------------------------

def init_params(key, d_model, n_head, ff_dim):
    dh = d_model // n_head
    keys = jax.random.split(key, 10)
    s = 0.02

    def nrm(k, shape):
        return s * jax.random.normal(k, shape, jnp.float32)

    def z(n):
        return jnp.zeros((n,), jnp.float32)

    wq = nrm(keys[0], (d_model, d_model))
    wk = nrm(keys[1], (d_model, d_model))
    wv = nrm(keys[2], (d_model, d_model))
    bf = jnp.bfloat16
    return dict(
        n_head=n_head,
        # weight matrices stored bf16 (MXU-native, halves weight DMA); biases / LN params fp32
        wqkv=jnp.concatenate([wq, wk, wv], axis=1).astype(bf),      # fused (D, 3D)
        bqkv=z(3 * d_model),
        wr=nrm(keys[3], (d_model, d_model)).astype(bf), br=z(d_model),
        wo=nrm(keys[4], (d_model, d_model)).astype(bf), bo=z(d_model),
        u=nrm(keys[5], (n_head, dh)),
        v=nrm(keys[6], (n_head, dh)),
        ln1_g=jnp.ones((d_model,), jnp.float32), ln1_b=z(d_model),
        ln2_g=jnp.ones((d_model,), jnp.float32), ln2_b=z(d_model),
        w1=nrm(keys[7], (d_model, ff_dim)).astype(bf), b1=z(ff_dim),
        w2=nrm(keys[8], (ff_dim, d_model)).astype(bf), b2=z(d_model),
    )


if __name__ == "__main__":
    B, L, D, H, FF = 2, 16, 128, 4, 256
    key = jax.random.PRNGKey(0)
    k_h, k_p, k_params = jax.random.split(key, 3)

    h = jax.random.normal(k_h, (B, L, D), jnp.float32)
    pos_embed = jax.random.normal(k_p, (2 * L - 1, D), jnp.float32)
    mask = jnp.ones((B, L), dtype=bool).at[1, L - 4:].set(False)   # pad last 4 keys of batch 1
    params = init_params(k_params, D, H, FF)

    out_post = rel_transformer_layer(h, mask, pos_embed, params, after_norm=True)
    out_pre = rel_transformer_layer(h, mask, pos_embed, params, after_norm=False)
    out_post, out_pre = jax.block_until_ready((out_post, out_pre))

    assert out_post.shape == (B, L, D) and out_pre.shape == (B, L, D)
    assert bool(jnp.all(jnp.isfinite(out_post))) and bool(jnp.all(jnp.isfinite(out_pre)))
    print("KERNEL_OK")
</pallas_src>

<mosaic_0001>
module attributes {stable_mosaic.version = 11 : i64} {
  func.func @_linear_kernel(%arg0: i32, %arg1: i32, %arg2: i32, %arg3: memref<32x128xf32, #tpu.memory_space<vmem>>, %arg4: memref<128x384xbf16, #tpu.memory_space<vmem>>, %arg5: memref<1x384xf32, #tpu.memory_space<vmem>>, %arg6: memref<32x384xbf16, #tpu.memory_space<vmem>>, %arg7: memref<32x384xf32, #tpu.memory_space<vmem>>) attributes {dimension_semantics = [#tpu.dimension_semantics<parallel>, #tpu.dimension_semantics<parallel>, #tpu.dimension_semantics<arbitrary>], iteration_bounds = array<i64: 1, 1, 1>, scalar_prefetch = 0 : i64, scratch_operands = 1 : i64, tpu.core_type = #tpu.core_type<tc>, window_params = [{transform_indices = @transform_0, window_bounds = array<i64: 32, 128>}, {transform_indices = @transform_1, window_bounds = array<i64: 128, 384>}, {transform_indices = @transform_2, window_bounds = array<i64: 1, 384>}, {transform_indices = @transform_3, window_bounds = array<i64: 32, 384>}]} {
    %c0_i32 = arith.constant 0 : i32
    %0 = arith.cmpi eq, %arg2, %c0_i32 : i32
    %1 = arith.extui %0 : i1 to i32
    %c0_i32_0 = arith.constant 0 : i32
    %2 = arith.cmpi ne, %1, %c0_i32_0 : i32
    scf.if %2 {
      %cst_10 = arith.constant 0.000000e+00 : f32
      %13 = vector.broadcast %cst_10 : f32 to vector<32x384xf32>
      %c0_11 = arith.constant 0 : index
      %c0_12 = arith.constant 0 : index
      %14 = vector.load %arg7[%c0_11, %c0_12] : memref<32x384xf32, #tpu.memory_space<vmem>>, vector<32x384xf32>
      tpu.vector_store %arg7[%c0_11, %c0_12], %13 {strides = array<i32>} : memref<32x384xf32, #tpu.memory_space<vmem>>, vector<32x384xf32>,
    } else {
    }
    %c0 = arith.constant 0 : index
    %c0_1 = arith.constant 0 : index
    %3 = vector.load %arg3[%c0, %c0_1] : memref<32x128xf32, #tpu.memory_space<vmem>>, vector<32x128xf32>
    %c0_2 = arith.constant 0 : index
    %c0_3 = arith.constant 0 : index
    %4 = vector.load %arg7[%c0_2, %c0_3] : memref<32x384xf32, #tpu.memory_space<vmem>>, vector<32x384xf32>
    %5 = arith.truncf %3 : vector<32x128xf32> to vector<32x128xbf16>
    %c0_4 = arith.constant 0 : index
    %c0_5 = arith.constant 0 : index
    %6 = vector.load %arg4[%c0_4, %c0_5] : memref<128x384xbf16, #tpu.memory_space<vmem>>, vector<128x384xbf16>
    %cst = arith.constant dense<0.000000e+00> : vector<32x384xf32>
    %7 = tpu.matmul %5, %6, %cst {dimension_numbers = #tpu.dot_dimension_numbers<[1], [0], [0], [1], [0, 0, 1, 1], [], []>} : vector<32x128xbf16>, vector<128x384xbf16>, vector<32x384xf32> -> vector<32x384xf32>
    %8 = arith.addf %4, %7 : vector<32x384xf32>
    %c0_6 = arith.constant 0 : index
    %c0_7 = arith.constant 0 : index
    %9 = vector.load %arg7[%c0_6, %c0_7] : memref<32x384xf32, #tpu.memory_space<vmem>>, vector<32x384xf32>
    tpu.vector_store %arg7[%c0_6, %c0_7], %8 {strides = array<i32>} : memref<32x384xf32, #tpu.memory_space<vmem>>, vector<32x384xf32>,
    %c0_i32_8 = arith.constant 0 : i32
    %10 = arith.cmpi eq, %arg2, %c0_i32_8 : i32
    %11 = arith.extui %10 : i1 to i32
    %c0_i32_9 = arith.constant 0 : i32
    %12 = arith.cmpi ne, %11, %c0_i32_9 : i32
    scf.if %12 {
      %c0_10 = arith.constant 0 : index
      %c0_11 = arith.constant 0 : index
      %13 = vector.load %arg7[%c0_10, %c0_11] : memref<32x384xf32, #tpu.memory_space<vmem>>, vector<32x384xf32>
      %c0_12 = arith.constant 0 : index
      %c0_13 = arith.constant 0 : index
      %14 = vector.load %arg5[%c0_12, %c0_13] : memref<1x384xf32, #tpu.memory_space<vmem>>, vector<1x384xf32>
      %15 = vector.broadcast %14 : vector<1x384xf32> to vector<32x384xf32>
      %16 = arith.addf %13, %15 : vector<32x384xf32>
      %17 = arith.truncf %16 : vector<32x384xf32> to vector<32x384xbf16>
      %c0_14 = arith.constant 0 : index
      %c0_15 = arith.constant 0 : index
      %18 = vector.load %arg6[%c0_14, %c0_15] : memref<32x384xbf16, #tpu.memory_space<vmem>>, vector<32x384xbf16>
      tpu.vector_store %arg6[%c0_14, %c0_15], %17 {strides = array<i32>} : memref<32x384xbf16, #tpu.memory_space<vmem>>, vector<32x384xbf16>,
    } else {
    }
    return
  }
  func.func @transform_0(%arg0: i32, %arg1: i32, %arg2: i32) -> (i32, i32) {
    %c0_i32 = arith.constant 0 : i32
    return %arg0, %arg2 : i32, i32
  }
  func.func @transform_1(%arg0: i32, %arg1: i32, %arg2: i32) -> (i32, i32) {
    %c0_i32 = arith.constant 0 : i32
    return %arg2, %arg1 : i32, i32
  }
  func.func @transform_2(%arg0: i32, %arg1: i32, %arg2: i32) -> (i32, i32) {
    %c0_i32 = arith.constant 0 : i32
    %c0_i32_0 = arith.constant 0 : i32
    return %c0_i32, %arg1 : i32, i32
  }
  func.func @transform_3(%arg0: i32, %arg1: i32, %arg2: i32) -> (i32, i32) {
    %c0_i32 = arith.constant 0 : i32
    return %arg0, %arg1 : i32, i32
  }
}

</mosaic_0001>

<bundles_post_ra>
// kernel: tpu_custom_call.1
= control target key start
LH: loop header
LB: loop body
LE: loop exit
PB: predicated region body
PF: predicated region fallthrough
CT: control target
= control target key end

     0   :  { %8 = vsyncpa [#allocation4], 0  ;;  %s690_s0 = inlined_call_operand.hbm [shape: f32[32,128], index: 0, kind: input, shape index: {}]   ;;  %s691_s1 = inlined_call_operand.hbm [shape: bf16[128,384], index: 1, kind: input, shape index: {}]   ;;  %s692_s2 = inlined_call_operand.hbm [shape: f32[1,384], index: 2, kind: input, shape index: {}]   ;;  %s693_s3 = inlined_call_operand.hbm [shape: bf16[32,384], index: 3, kind: output, shape index: {}]  }
   0x1   :  { %9 = vsyncpa [#allocation7], 0  ;;  %s28_s14 = sshll.u32 %s691_s1, 4  ;;  %s29_s14 = int_to_ptr.hbm [resolvable:$true] %s28_s14 }
   0x2   :  { %10 = vsyncpa [#allocation5], 0  ;;  %s644_s15 = smov [#allocation6]   ;;  %s15_s19 = sshll.u32 %s690_s0, 4  ;;  %s16_s19 = int_to_ptr.hbm [resolvable:$true] %s15_s19 }
   0x3   :  { %s30_s16 = sshll.u32 %s644_s15, 4  ;;  %s645_s20 = smov 192   ;;  %s31_s16 = int_to_ptr.vmem [resolvable:$true] %s30_s16 }
   0x4   :  { %s646_s21 = smov 12   ;;  %s647_s22 = smov [#allocation3]  }
   0x5   :  { %36 = dma.hbm_to_vmem [thread:$0]  %s29_s14, 3072, %s31_s16, [#allocation7], %s645_s20, %s645_s20, %s646_s21  }
   0x6   :  { %s17_s23 = sshll.u32 %s647_s22, 4  ;;  %s648_s1 = smov 128   ;;  %s18_s23 = int_to_ptr.vmem [resolvable:$true] %s17_s23 }
   0x7   :  { %s649_s24 = smov 8   ;;  %s42_s27 = sshll.u32 %s692_s2, 4  ;;  %s43_s27 = int_to_ptr.hbm [resolvable:$true] %s42_s27 }
   0x8   :  { %23 = dma.hbm_to_vmem [thread:$0]  %s16_s19, 512, %s18_s23, [#allocation4], %s648_s1, %s648_s1, %s649_s24  }
   0x9   :  { %s650_s28 = smov [#allocation8]  }
   0xa   :  { %s44_s0 = sshll.u32 %s650_s28, 4  ;;  %s45_s0 = int_to_ptr.vmem [resolvable:$true] %s44_s0 }
   0xb   :  { %47 = dma.hbm_to_vmem [thread:$0]  %s43_s27, 48, %s45_s0, [#allocation7]  }
   0xc   :  { %638 = dma.done.wait [#allocation4], 512  }
   0xd   :  { %639 = vsyncadd [#allocation4], 4294966784 }
   0xe   :  { %640 = dma.done.wait [#allocation7], 3120  }
   0xf   :  { %641 = vsyncadd [#allocation7], 4294964176  ;;  %v492_v0 = vld [vmem:[#allocation6 + $0xa8] sm:$0xf]  ;;  %v524_v1 = vld [vmem:[#allocation6 + $0xb0] sm:$0xf0] }
  0x10   :  { %v523_v2 = vld [vmem:[#allocation6 + $0xac] sm:$0xf]  ;;  %v493_v3 = vor.u32 %v524_v1, %v492_v0  ;;  %v494_v4 = vld [vmem:[#allocation6 + $0xb4] sm:$0xf0]  ;;  %v500_v5 = vld [vmem:[#allocation6 + $0xb0] sm:$0xf] }
  0x11   :  { %v525_v6 = vld [vmem:[#allocation6 + $0xb8] sm:$0xf0]  ;;  %v497_v7 = vor.u32 %v523_v2, %v494_v4  ;;  %v480_v9 = vld [vmem:[#allocation6 + $0x90] sm:$0xf]  ;;  %v520_v11 = vld [vmem:[#allocation6 + $0x94] sm:$0xf] }
  0x12   :  { %v501_v8 = vor.u32 %v525_v6, %v500_v5  ;;  %v521_v10 = vld [vmem:[#allocation6 + $0x98] sm:$0xf0]  ;;  %254 = vmatpush.bf16.msra.mxu0 %v493_v3  ;;  %v482_v13 = vld [vmem:[#allocation6 + $0x9c] sm:$0xf0]  ;;  %v488_v14 = vld [vmem:[#allocation6 + $0x98] sm:$0xf]  ;;  %526 = vmatpush.bf16.msra.mxu3 %v493_v3 }
  0x13   :  { %v481_v12 = vor.u32 %v521_v10, %v480_v9  ;;  %v522_v15 = vld [vmem:[#allocation6 + $0xa0] sm:$0xf0]  ;;  %273 = vmatpush.bf16.msra.mxu1 %v497_v7  ;;  %v485_v16 = vor.u32 %v520_v11, %v482_v13  ;;  %v468_v18 = vld [vmem:[#allocation6 + $0x78] sm:$0xf]  ;;  %v517_v20 = vld [vmem:[#allocation6 + $0x7c] sm:$0xf] }
  0x14   :  { %292 = vmatpush.bf16.msra.mxu2 %v501_v8  ;;  %v489_v17 = vor.u32 %v522_v15, %v488_v14  ;;  %v518_v19 = vld [vmem:[#allocation6 + $0x80] sm:$0xf0]  ;;  %v470_v21 = vld [vmem:[#allocation6 + $0x84] sm:$0xf0]  ;;  %v476_v22 = vld [vmem:[#allocation6 + $0x80] sm:$0xf] }
  0x15   :  { %v519_v23 = vld [vmem:[#allocation6 + $0x88] sm:$0xf0]  ;;  %v469_v24 = vor.u32 %v518_v19, %v468_v18  ;;  %v473_v25 = vor.u32 %v517_v20, %v470_v21  ;;  %v456_v27 = vld [vmem:[#allocation6 + $0x60] sm:$0xf]  ;;  %v514_v29 = vld [vmem:[#allocation6 + $0x64] sm:$0xf] }
  0x16   :  { %255 = vmatpush.bf16.msra.mxu0 %v481_v12  ;;  %527 = vmatpush.bf16.msra.mxu3 %v481_v12  ;;  %v477_v26 = vor.u32 %v519_v23, %v476_v22  ;;  %v515_v28 = vld [vmem:[#allocation6 + $0x68] sm:$0xf0]  ;;  %v458_v30 = vld [vmem:[#allocation6 + $0x6c] sm:$0xf0]  ;;  %v464_v31 = vld [vmem:[#allocation6 + $0x68] sm:$0xf] }
  0x17   :  { %274 = vmatpush.bf16.msra.mxu1 %v485_v16  ;;  %v516_v32 = vld [vmem:[#allocation6 + $0x70] sm:$0xf0]  ;;  %v457_v33 = vor.u32 %v515_v28, %v456_v27  ;;  %v461_v34 = vor.u32 %v514_v29, %v458_v30  ;;  %v444_v36 = vld [vmem:[#allocation6 + $0x48] sm:$0xf]  ;;  %v511_v38 = vld [vmem:[#allocation6 + $0x4c] sm:$0xf] }
  0x18   :  { %293 = vmatpush.bf16.msra.mxu2 %v489_v17  ;;  %v465_v35 = vor.u32 %v516_v32, %v464_v31  ;;  %v512_v37 = vld [vmem:[#allocation6 + $0x50] sm:$0xf0]  ;;  %v446_v39 = vld [vmem:[#allocation6 + $0x54] sm:$0xf0]  ;;  %v452_v40 = vld [vmem:[#allocation6 + $0x50] sm:$0xf] }
  0x19   :  { %v513_v41 = vld [vmem:[#allocation6 + $0x58] sm:$0xf0]  ;;  %v445_v42 = vor.u32 %v512_v37, %v444_v36  ;;  %v449_v43 = vor.u32 %v511_v38, %v446_v39  ;;  %v432_v45 = vld [vmem:[#allocation6 + $0x30] sm:$0xf]  ;;  %v508_v47 = vld [vmem:[#allocation6 + $0x34] sm:$0xf] }
  0x1a   :  { %256 = vmatpush.bf16.msra.mxu0 %v469_v24  ;;  %528 = vmatpush.bf16.msra.mxu3 %v469_v24  ;;  %v453_v44 = vor.u32 %v513_v41, %v452_v40  ;;  %v509_v46 = vld [vmem:[#allocation6 + $0x38] sm:$0xf0]  ;;  %v434_v48 = vld [vmem:[#allocation6 + $0x3c] sm:$0xf0]  ;;  %v440_v49 = vld [vmem:[#allocation6 + $0x38] sm:$0xf] }
  0x1b   :  { %275 = vmatpush.bf16.msra.mxu1 %v473_v25  ;;  %v510_v50 = vld [vmem:[#allocation6 + $0x40] sm:$0xf0]  ;;  %v433_v51 = vor.u32 %v509_v46, %v432_v45  ;;  %v437_v52 = vor.u32 %v508_v47, %v434_v48  ;;  %v420_v54 = vld [vmem:[#allocation6 + $0x18] sm:$0xf]  ;;  %v505_v56 = vld [vmem:[#allocation6 + $0x1c] sm:$0xf] }
  0x1c   :  { %294 = vmatpush.bf16.msra.mxu2 %v477_v26  ;;  %v441_v53 = vor.u32 %v510_v50, %v440_v49  ;;  %v506_v55 = vld [vmem:[#allocation6 + $0x20] sm:$0xf0]  ;;  %v422_v57 = vld [vmem:[#allocation6 + $0x24] sm:$0xf0]  ;;  %v428_v58 = vld [vmem:[#allocation6 + $0x20] sm:$0xf] }
  0x1d   :  { %v507_v59 = vld [vmem:[#allocation6 + $0x28] sm:$0xf0]  ;;  %v421_v60 = vor.u32 %v506_v55, %v420_v54  ;;  %v425_v61 = vor.u32 %v505_v56, %v422_v57  ;;  %v408_v63 = vld [vmem:[#allocation6] sm:$0xf]  ;;  %v502_v1 = vld [vmem:[#allocation6 + $0x4] sm:$0xf] }
  0x1e   :  { %257 = vmatpush.bf16.msra.mxu0 %v457_v33  ;;  %529 = vmatpush.bf16.msra.mxu3 %v457_v33  ;;  %v429_v62 = vor.u32 %v507_v59, %v428_v58  ;;  %v503_v0 = vld [vmem:[#allocation6 + $0x8] sm:$0xf0]  ;;  %v410_v2 = vld [vmem:[#allocation6 + $0xc] sm:$0xf0]  ;;  %v416_v3 = vld [vmem:[#allocation6 + $0x8] sm:$0xf] }
  0x1f   :  { %276 = vmatpush.bf16.msra.mxu1 %v461_v34  ;;  %v504_v4 = vld [vmem:[#allocation6 + $0x10] sm:$0xf0]  ;;  %v76_v5 = vld [vmem:[#allocation3] sm:$0xff]  ;;  %v409_v6 = vor.u32 %v503_v0, %v408_v63  ;;  %v77_v7 = vld [vmem:[#allocation3 + $0x8] sm:$0xff]  ;;  %v413_v10 = vor.u32 %v502_v1, %v410_v2  ;;  %s651_s2 = smov [#allocation9]   ;;  %s392_s5 = sshll.u32 %s693_s3, 4  ;;  %s393_s5 = int_to_ptr.hbm [resolvable:$true] %s392_s5 }
  0x20   :  { %295 = vmatpush.bf16.msra.mxu2 %v465_v35  ;;  %v78_v8 = vld [vmem:[#allocation3 + $0x10] sm:$0xff]  ;;  %v79_v9 = vld [vmem:[#allocation3 + $0x18] sm:$0xff]  ;;  %v417_v11 = vor.u32 %v504_v4, %v416_v3  ;;  %v92_v12 = vpack.c.bf16 %v77_v7, %v76_v5  ;;  %v350_v14 = vld [vmem:[#allocation8] sm:$0x7]  ;;  %s390_s29 = sshll.u32 %s651_s2, 4  ;;  %s391_s29 = int_to_ptr.vmem [resolvable:$true] %s390_s29 }
  0x21   :  { %v93_v13 = vpack.c.bf16 %v79_v9, %v78_v8  ;;  %v352_v15 = vperm.slane %v350_v14, 0  ;;  %v353_v16 = vperm.slane %v350_v14, 1  ;;  %v354_v22 = vperm.slane %v350_v14, 2 }
  0x22   :  { %258 = vmatpush.bf16.msra.mxu0 %v445_v42  ;;  %530 = vmatpush.bf16.msra.mxu3 %v445_v42 }
  0x23   :  { %277 = vmatpush.bf16.msra.mxu1 %v449_v43 }
  0x24   :  { %296 = vmatpush.bf16.msra.mxu2 %v453_v44 }
  0x26   :  { %259 = vmatpush.bf16.msra.mxu0 %v433_v51  ;;  %531 = vmatpush.bf16.msra.mxu3 %v433_v51 }
  0x27   :  { %278 = vmatpush.bf16.msra.mxu1 %v437_v52 }
  0x28   :  { %297 = vmatpush.bf16.msra.mxu2 %v441_v53 }
  0x2a   :  { %260 = vmatpush.bf16.msra.mxu0 %v421_v60  ;;  %532 = vmatpush.bf16.msra.mxu3 %v421_v60 }
  0x2b   :  { %279 = vmatpush.bf16.msra.mxu1 %v425_v61 }
  0x2c   :  { %298 = vmatpush.bf16.msra.mxu2 %v429_v62 }
  0x2e   :  { %261 = vmatpush.bf16.msra.mxu0 %v409_v6  ;;  %533 = vmatpush.bf16.msra.mxu3 %v409_v6 }
  0x2f   :  { %280 = vmatpush.bf16.msra.mxu1 %v413_v10 }
  0x30   :  { %299 = vmatpush.bf16.msra.mxu2 %v417_v11 }
  0x31   :  { %262 = vmatmul.bf16.vlgmr.msra.gmra.mxu0 %v92_v12  ;;  %267 = vmatmul.bf16.vlgmr.msra.gmra.mxu3 %v93_v13 }
  0x32   :  { %281 = vmatmul.bf16.vlgmr.msra.gmra.mxu1 %v92_v12 }
  0x33   :  { %300 = vmatmul.bf16.vlgmr.msra.gmra.mxu2 %v92_v12 }
  0x42   :  { %286 = vmatmul.bf16.gmra.mxu1 %v93_v13 }
  0x43   :  { %305 = vmatmul.bf16.gmra.mxu2 %v93_v13 }
  0xae   :  { %v263_v17 = vpop.f32.mrf.mxu0 }
  0xaf   :  { %v358_v18 = vadd.f32 %v352_v15, %v263_v17  ;;  %v282_v19 = vpop.f32.mrf.mxu1 }
  0xb0   :  { %v359_v20 = vadd.f32 %v353_v16, %v282_v19 }
  0xb2   :  { %v370_v21 = vpack.c.bf16 %v359_v20, %v358_v18 }
  0xb4   :  { %378 = vst [vmem:[#allocation9] sm:$0xff] %v370_v21  ;;  %v268_v31 = vpop.f32.mrf.mxu3 }
  0xb5   :  { %v364_v33 = vadd.f32 %v352_v15, %v268_v31 }
  0xb6   :  { %v301_v23 = vpop.f32.mrf.mxu2  ;;  %v265_v25 = vpop.f32.mrf.mxu0 }
  0xb7   :  { %v360_v24 = vadd.f32 %v354_v22, %v301_v23  ;;  %v361_v26 = vadd.f32 %v352_v15, %v265_v25  ;;  %v284_v27 = vpop.f32.mrf.mxu1 }
  0xb8   :  { %v362_v29 = vadd.f32 %v353_v16, %v284_v27 }
  0xb9   :  { %v371_v28 = vpack.c.bf16 %v360_v24, %v360_v24 }
  0xba   :  { %v372_v30 = vpack.c.bf16 %v362_v29, %v361_v26 }
  0xbb   :  { %379 = vst [vmem:[#allocation9 + $0x8] sm:$0xf] %v371_v28 }
  0xbc   :  { %380 = vst [vmem:[#allocation9 + $0xc] sm:$0xff] %v372_v30  ;;  %v270_v39 = vpop.f32.mrf.mxu3 }
  0xbd   :  { %v367_v43 = vadd.f32 %v352_v15, %v270_v39 }
  0xbe   :  { %v303_v32 = vpop.f32.mrf.mxu2 }
  0xbf   :  { %v363_v34 = vadd.f32 %v354_v22, %v303_v32  ;;  %v287_v35 = vpop.f32.mrf.mxu1 }
  0xc0   :  { %v365_v37 = vadd.f32 %v353_v16, %v287_v35 }
  0xc1   :  { %v373_v36 = vpack.c.bf16 %v363_v34, %v363_v34 }
  0xc2   :  { %v374_v38 = vpack.c.bf16 %v365_v37, %v364_v33 }
  0xc3   :  { %381 = vst [vmem:[#allocation9 + $0x14] sm:$0xf] %v373_v36 }
  0xc4   :  { %382 = vst [vmem:[#allocation9 + $0x18] sm:$0xff] %v374_v38 }
  0xc6   :  { %v306_v40 = vpop.f32.mrf.mxu2 }
  0xc7   :  { %v366_v41 = vadd.f32 %v354_v22, %v306_v40  ;;  %v289_v42 = vpop.f32.mrf.mxu1 }
  0xc8   :  { %v368_v45 = vadd.f32 %v353_v16, %v289_v42 }
  0xc9   :  { %v375_v44 = vpack.c.bf16 %v366_v41, %v366_v41 }
  0xca   :  { %v376_v46 = vpack.c.bf16 %v368_v45, %v367_v43 }
  0xcb   :  { %383 = vst [vmem:[#allocation9 + $0x20] sm:$0xf] %v375_v44 }
  0xcc   :  { %384 = vst [vmem:[#allocation9 + $0x24] sm:$0xff] %v376_v46 }
  0xce   :  { %v308_v47 = vpop.f32.mrf.mxu2 }
  0xcf   :  { %v369_v48 = vadd.f32 %v354_v22, %v308_v47 }
  0xd1   :  { %v377_v49 = vpack.c.bf16 %v369_v48, %v369_v48 }
  0xd3   :  { %385 = vst [vmem:[#allocation9 + $0x2c] sm:$0xf] %v377_v49 }
  0xd4   :  { %398 = dma.vmem_to_hbm [thread:$0]  %s391_s29, 768, %s393_s5, [#allocation5], %s645_s20, %s645_s20, %s646_s21  }
  0xd5   :  { %642 = dma.done.wait [#allocation5], 768  }
  0xd6   :  { %643 = vsyncadd [#allocation5], 4294966528 }
  0xd7   :  { %403 = vsyncpa [#allocation4], 1 }
  0xd8   :  { %404 = vsyncpa [#allocation7], 1 }
  0xd9   :  { %405 = vsyncpa [#allocation5], 1 }

</bundles_post_ra>
